<compile_context>
chip_gen: v7x
topology: tpu7x:2x2x1
jax: 0.10.0
libtpu: 0.0.40
codegen_flags: <defaults>
</compile_context>

<pallas_src>
import math
import jax
import jax.numpy as jnp
from jax import lax
from jax.experimental import pallas as pl
from jax.experimental.pallas import tpu as pltpu


# ---------------------------------------------------------------------------
# Kernel: one block of Bt sequences; full L resident (needed for circular shift).
# ---------------------------------------------------------------------------
def embed_kernel(x_ref, mark_ref, ids_ref, wc_ref, wt_ref, emb_ref, pe_ref, o_ref):
    Bt, L, c_in = x_ref.shape
    T = mark_ref.shape[-1]
    seq_num, D = emb_ref.shape
    rows = Bt * L

    x = x_ref[...]                                          # (Bt, L, c_in)
    # Circular shifts along the (fully resident) time axis, built in VMEM.
    #   x_prev[:, t] = x[:, t-1] ; x_next[:, t] = x[:, t+1]   (wrap-around)
    if L > 1:
        x_prev = jnp.concatenate([x[:, L - 1:, :], x[:, :L - 1, :]], axis=1)
        x_next = jnp.concatenate([x[:, 1:, :], x[:, :1, :]], axis=1)
    else:
        x_prev = x
        x_next = x

    # Tiny contractions against the resident weights; all accumulate in f32.
    y = jnp.dot(x_prev.reshape(rows, c_in), wc_ref[0],
                preferred_element_type=jnp.float32)
    y = y + jnp.dot(x.reshape(rows, c_in), wc_ref[1],
                    preferred_element_type=jnp.float32)
    y = y + jnp.dot(x_next.reshape(rows, c_in), wc_ref[2],
                    preferred_element_type=jnp.float32)
    y = y + jnp.dot(mark_ref[...].reshape(rows, T), wt_ref[...],
                    preferred_element_type=jnp.float32)

    # seq-id embedding as an in-VMEM one-hot matmul (the one-hot never touches HBM).
    # TODO(synk): for seq_num >> 32 switch to an in-VMEM gather from the resident
    # table instead of a one-hot contraction.
    iota = lax.broadcasted_iota(jnp.int32, (Bt, L, seq_num), 2)
    onehot = (ids_ref[...] == iota).astype(emb_ref.dtype)
    y = y + jnp.dot(onehot.reshape(rows, seq_num), emb_ref[...],
                    preferred_element_type=jnp.float32)

    # + (positional encoding + conv bias + linear bias), then cast & store.
    y = y.reshape(Bt, L, D) + pe_ref[...][None]
    o_ref[...] = y.astype(o_ref.dtype)


# ---------------------------------------------------------------------------
# Host-side helpers
# ---------------------------------------------------------------------------
def positional_encoding(L, d_model):
    pos = jnp.arange(L, dtype=jnp.float32)[:, None]
    div = jnp.exp(jnp.arange(0, d_model, 2, dtype=jnp.float32)
                  * (-math.log(10000.0) / d_model))
    sin = jnp.sin(pos * div)
    cos = jnp.cos(pos * div)
    pe = jnp.zeros((L, d_model), jnp.float32)
    pe = pe.at[:, 0::2].set(sin)
    pe = pe.at[:, 1::2].set(cos[:, : d_model // 2])   # guard odd d_model
    return pe


def _tpu_config():
    """(num_tensorcores, vmem_limit_bytes_or_None, per-step VMEM block budget)."""
    try:
        kind = jax.devices()[0].device_kind.lower()
    except Exception:
        kind = ""
    if "v7" in kind:                                   # 2 TCs, 64 MiB physical VMEM
        return 2, 48 << 20, 24 << 20
    if "v5 lite" in kind or "v5e" in kind or "v6" in kind:
        return 1, 96 << 20, 56 << 20                   # single TC, 128 MiB VMEM
    return 2, None, 10 << 20                           # unknown: stay conservative


def _choose_bt(B, L, c_in, T, seq_num, D, in_item, out_item, num_tc, budget):
    """Sequences per grid step: as large as a complete VMEM accounting allows,
    but keep >= num_tc grid steps so every TensorCore gets work on multi-core
    chips (no such clamp on single-TC chips, where extra steps are pure overhead)."""
    per_seq = (
        2 * L * (c_in + T) * in_item          # x + temporal blocks (double-buffered)
        + 2 * L * 4                           # int32 ids block (double-buffered)
        + 2 * L * D * out_item                # output block (double-buffered)
        + L * D * 4                           # f32 accumulator
        + L * (2 * c_in + seq_num) * in_item  # x_prev / x_next / one-hot temporaries
    )
    resident = 2 * ((3 * c_in + T + seq_num) * D * in_item + L * D * 4)
    avail = max(budget - resident, per_seq)
    bt = max(1, min(B, avail // max(per_seq, 1)))
    if num_tc > 1 and B >= num_tc:
        bt = min(bt, max(1, B // num_tc))
    while B % bt:                                      # must tile the batch exactly
        bt -= 1
    return bt


def custom_embedding(x, x_mark, params, *, compute_dtype=jnp.bfloat16, out_dtype=None):
    """x: (B, L, c_in); x_mark: (B, L, temporal_size + 1), last channel = seq id."""
    if out_dtype is None:
        out_dtype = compute_dtype
    B, L, c_in = x.shape
    w_conv = params["w_conv"]                          # (3, c_in, d_model)
    d_model = w_conv.shape[-1]
    T = x_mark.shape[-1] - 1
    emb_table = params["emb_table"]                    # (seq_num, d_model)
    seq_num = emb_table.shape[0]

    # Kernel inputs from HBM: no duplicated x copies, no one-hot columns.
    x_c = x.astype(compute_dtype)
    temporal = x_mark[:, :, :T].astype(compute_dtype)
    ids = jnp.clip(x_mark[:, :, T:].astype(jnp.int32), 0, seq_num - 1)   # (B, L, 1)

    # Resident weights; conv/linear biases folded into the positional slab (f32).
    w_conv_c = w_conv.astype(compute_dtype)
    w_lin_c = params["w_lin"].astype(compute_dtype)
    emb_c = emb_table.astype(compute_dtype)
    pe_plus = (positional_encoding(L, d_model)
               + params["b_conv"].reshape(1, d_model)
               + params["b_lin"].reshape(1, d_model)).astype(jnp.float32)

    num_tc, vmem_limit, budget = _tpu_config()
    in_item = jnp.dtype(compute_dtype).itemsize
    out_item = jnp.dtype(out_dtype).itemsize
    Bt = _choose_bt(B, L, c_in, T, seq_num, d_model, in_item, out_item, num_tc, budget)
    grid = (B // Bt,)

    k_total = 3 * c_in + T + seq_num
    cost = pl.CostEstimate(
        flops=int(2 * B * L * k_total * d_model),
        transcendentals=0,
        bytes_accessed=int(B * L * ((c_in + T) * in_item + 4)
                           + k_total * d_model * in_item + L * d_model * 4
                           + B * L * d_model * out_item))

    out = pl.pallas_call(
        embed_kernel,
        out_shape=jax.ShapeDtypeStruct((B, L, d_model), out_dtype),
        grid=grid,
        in_specs=[
            pl.BlockSpec((Bt, L, c_in), lambda b: (b, 0, 0)),        # x
            pl.BlockSpec((Bt, L, T), lambda b: (b, 0, 0)),           # temporal marks
            pl.BlockSpec((Bt, L, 1), lambda b: (b, 0, 0)),           # seq ids (int32)
            pl.BlockSpec((3, c_in, d_model), lambda b: (0, 0, 0)),   # conv taps (resident)
            pl.BlockSpec((T, d_model), lambda b: (0, 0)),            # temporal linear
            pl.BlockSpec((seq_num, d_model), lambda b: (0, 0)),      # seq-id table
            pl.BlockSpec((L, d_model), lambda b: (0, 0)),            # pe + biases (f32)
        ],
        out_specs=pl.BlockSpec((Bt, L, d_model), lambda b: (b, 0, 0)),
        compiler_params=pltpu.CompilerParams(
            dimension_semantics=("parallel",),
            vmem_limit_bytes=vmem_limit),
        cost_estimate=cost,
    )(x_c, temporal, ids, w_conv_c, w_lin_c, emb_c, pe_plus)

    # TODO(synk): training-mode Dropout(p=0.1) not implemented (identity / eval mode).
    return out


# ---------------------------------------------------------------------------
# Pure-JAX reference of the same forward (dropout = identity)
# ---------------------------------------------------------------------------
def reference(x, x_mark, params):
    B, L, c_in = x.shape
    d_model = params["w_conv"].shape[-1]
    T = x_mark.shape[-1] - 1
    y_prev = jnp.roll(x, 1, axis=1)
    y_next = jnp.roll(x, -1, axis=1)
    conv = (jnp.einsum("blc,cd->bld", y_prev, params["w_conv"][0])
            + jnp.einsum("blc,cd->bld", x, params["w_conv"][1])
            + jnp.einsum("blc,cd->bld", y_next, params["w_conv"][2])
            + params["b_conv"])
    pe = positional_encoding(L, d_model)
    lin = jnp.einsum("blt,td->bld", x_mark[:, :, :T], params["w_lin"]) + params["b_lin"]
    ids = x_mark[:, :, -1].astype(jnp.int32)
    sid = params["emb_table"][ids]
    return conv + pe[None] + lin + sid


if __name__ == "__main__":
    # small shapes consistent with the module
    B, L, c_in, d_model = 2, 8, 4, 32
    temporal_size, seq_num = 5, 7

    key = jax.random.PRNGKey(0)
    k = jax.random.split(key, 8)

    # deterministic synthetic parameters (shapes per nn.Module __init__)
    fan_in_conv = c_in * 3
    w_conv = (jax.random.normal(k[0], (3, c_in, d_model), jnp.float32)
              * math.sqrt(2.0 / fan_in_conv))                # kaiming_normal, fan_in
    b_conv = jax.random.uniform(k[1], (1, d_model), jnp.float32,
                                -1.0 / math.sqrt(fan_in_conv),
                                1.0 / math.sqrt(fan_in_conv))
    w_lin = (jax.random.normal(k[2], (temporal_size, d_model), jnp.float32)
             / math.sqrt(temporal_size))
    b_lin = jax.random.uniform(k[3], (1, d_model), jnp.float32,
                               -1.0 / math.sqrt(temporal_size),
                               1.0 / math.sqrt(temporal_size))
    emb_table = jax.random.normal(k[4], (seq_num, d_model), jnp.float32)
    params = dict(w_conv=w_conv, b_conv=b_conv, w_lin=w_lin, b_lin=b_lin,
                  emb_table=emb_table)

    # inputs
    x = jax.random.normal(k[5], (B, L, c_in), jnp.float32)
    temporal = jax.random.normal(k[6], (B, L, temporal_size), jnp.float32)
    ids = jax.random.randint(k[7], (B, L, 1), 0, seq_num).astype(jnp.float32)
    x_mark = jnp.concatenate([temporal, ids], axis=-1)       # (B, L, temporal_size+1)

    ref = reference(x, x_mark, params)

    # Default path: bf16 inputs/weights/output, f32 MXU accumulation (HBM-minimal).
    out = jax.block_until_ready(custom_embedding(x, x_mark, params))
    assert out.shape == (B, L, d_model) and out.dtype == jnp.bfloat16
    assert jnp.allclose(out.astype(jnp.float32), ref, atol=2e-1, rtol=2e-1), \
        "bf16 mismatch vs reference"

    # f32 path: tight correctness check.
    out_f32 = jax.block_until_ready(
        custom_embedding(x, x_mark, params,
                         compute_dtype=jnp.float32, out_dtype=jnp.float32))
    assert out_f32.shape == (B, L, d_model) and out_f32.dtype == jnp.float32
    assert jnp.allclose(out_f32, ref, atol=2e-3, rtol=2e-3), "f32 mismatch vs reference"

    print("KERNEL_OK")
</pallas_src>

<mosaic_0001>
module attributes {stable_mosaic.version = 11 : i64} {
  func.func @embed_kernel(%arg0: i32, %arg1: memref<1x8x4xbf16, #tpu.memory_space<vmem>>, %arg2: memref<1x8x5xbf16, #tpu.memory_space<vmem>>, %arg3: memref<1x8x1xi32, #tpu.memory_space<vmem>>, %arg4: memref<3x4x32xbf16, #tpu.memory_space<vmem>>, %arg5: memref<5x32xbf16, #tpu.memory_space<vmem>>, %arg6: memref<7x32xbf16, #tpu.memory_space<vmem>>, %arg7: memref<8x32xf32, #tpu.memory_space<vmem>>, %arg8: memref<1x8x32xbf16, #tpu.memory_space<vmem>>) attributes {dimension_semantics = [#tpu.dimension_semantics<parallel>], iteration_bounds = array<i64: 2>, scalar_prefetch = 0 : i64, scratch_operands = 0 : i64, tpu.core_type = #tpu.core_type<tc>, window_params = [{transform_indices = @transform_0, window_bounds = array<i64: 1, 8, 4>}, {transform_indices = @transform_1, window_bounds = array<i64: 1, 8, 5>}, {transform_indices = @transform_2, window_bounds = array<i64: 1, 8, 1>}, {pipeline_mode = #tpu.pipeline_mode<synchronous>, transform_indices = @transform_3, window_bounds = array<i64: 3, 4, 32>}, {pipeline_mode = #tpu.pipeline_mode<synchronous>, transform_indices = @transform_4, window_bounds = array<i64: 5, 32>}, {pipeline_mode = #tpu.pipeline_mode<synchronous>, transform_indices = @transform_5, window_bounds = array<i64: 7, 32>}, {pipeline_mode = #tpu.pipeline_mode<synchronous>, transform_indices = @transform_6, window_bounds = array<i64: 8, 32>}, {transform_indices = @transform_7, window_bounds = array<i64: 1, 8, 32>}]} {
    %c0 = arith.constant 0 : index
    %c0_0 = arith.constant 0 : index
    %c0_1 = arith.constant 0 : index
    %0 = vector.load %arg1[%c0, %c0_0, %c0_1] : memref<1x8x4xbf16, #tpu.memory_space<vmem>>, vector<1x8x4xbf16>
    %1 = vector.extract_strided_slice %0 {offsets = [0, 7, 0], sizes = [1, 1, 4], strides = [1, 1, 1]} : vector<1x8x4xbf16> to vector<1x1x4xbf16>
    %2 = vector.extract_strided_slice %0 {offsets = [0, 0, 0], sizes = [1, 7, 4], strides = [1, 1, 1]} : vector<1x8x4xbf16> to vector<1x7x4xbf16>
    %3 = tpu.concatenate %1, %2 in 1 : vector<1x1x4xbf16>, vector<1x7x4xbf16> -> vector<1x8x4xbf16>
    %4 = vector.extract_strided_slice %0 {offsets = [0, 1, 0], sizes = [1, 7, 4], strides = [1, 1, 1]} : vector<1x8x4xbf16> to vector<1x7x4xbf16>
    %5 = vector.extract_strided_slice %0 {offsets = [0, 0, 0], sizes = [1, 1, 4], strides = [1, 1, 1]} : vector<1x8x4xbf16> to vector<1x1x4xbf16>
    %6 = tpu.concatenate %4, %5 in 1 : vector<1x7x4xbf16>, vector<1x1x4xbf16> -> vector<1x8x4xbf16>
    %7 = vector.shape_cast %3 : vector<1x8x4xbf16> to vector<8x4xbf16>
    %c0_2 = arith.constant 0 : index
    %c0_3 = arith.constant 0 : index
    %c0_4 = arith.constant 0 : index
    %8 = vector.load %arg4[%c0_2, %c0_3, %c0_4] : memref<3x4x32xbf16, #tpu.memory_space<vmem>>, vector<1x4x32xbf16>
    %9 = vector.shape_cast %8 : vector<1x4x32xbf16> to vector<4x32xbf16>
    %cst = arith.constant dense<0.000000e+00> : vector<8x32xf32>
    %10 = tpu.matmul %7, %9, %cst {dimension_numbers = #tpu.dot_dimension_numbers<[1], [0], [0], [1], [0, 0, 1, 1], [], []>} : vector<8x4xbf16>, vector<4x32xbf16>, vector<8x32xf32> -> vector<8x32xf32>
    %11 = vector.shape_cast %0 : vector<1x8x4xbf16> to vector<8x4xbf16>
    %c1 = arith.constant 1 : index
    %c0_5 = arith.constant 0 : index
    %c0_6 = arith.constant 0 : index
    %12 = vector.load %arg4[%c1, %c0_5, %c0_6] : memref<3x4x32xbf16, #tpu.memory_space<vmem>>, vector<1x4x32xbf16>
    %13 = vector.shape_cast %12 : vector<1x4x32xbf16> to vector<4x32xbf16>
    %cst_7 = arith.constant dense<0.000000e+00> : vector<8x32xf32>
    %14 = tpu.matmul %11, %13, %cst_7 {dimension_numbers = #tpu.dot_dimension_numbers<[1], [0], [0], [1], [0, 0, 1, 1], [], []>} : vector<8x4xbf16>, vector<4x32xbf16>, vector<8x32xf32> -> vector<8x32xf32>
    %15 = arith.addf %10, %14 : vector<8x32xf32>
    %16 = vector.shape_cast %6 : vector<1x8x4xbf16> to vector<8x4xbf16>
    %c2 = arith.constant 2 : index
    %c0_8 = arith.constant 0 : index
    %c0_9 = arith.constant 0 : index
    %17 = vector.load %arg4[%c2, %c0_8, %c0_9] : memref<3x4x32xbf16, #tpu.memory_space<vmem>>, vector<1x4x32xbf16>
    %18 = vector.shape_cast %17 : vector<1x4x32xbf16> to vector<4x32xbf16>
    %cst_10 = arith.constant dense<0.000000e+00> : vector<8x32xf32>
    %19 = tpu.matmul %16, %18, %cst_10 {dimension_numbers = #tpu.dot_dimension_numbers<[1], [0], [0], [1], [0, 0, 1, 1], [], []>} : vector<8x4xbf16>, vector<4x32xbf16>, vector<8x32xf32> -> vector<8x32xf32>
    %20 = arith.addf %15, %19 : vector<8x32xf32>
    %c0_11 = arith.constant 0 : index
    %c0_12 = arith.constant 0 : index
    %c0_13 = arith.constant 0 : index
    %21 = vector.load %arg2[%c0_11, %c0_12, %c0_13] : memref<1x8x5xbf16, #tpu.memory_space<vmem>>, vector<1x8x5xbf16>
    %22 = vector.shape_cast %21 : vector<1x8x5xbf16> to vector<8x5xbf16>
    %c0_14 = arith.constant 0 : index
    %c0_15 = arith.constant 0 : index
    %23 = vector.load %arg5[%c0_14, %c0_15] : memref<5x32xbf16, #tpu.memory_space<vmem>>, vector<5x32xbf16>
    %cst_16 = arith.constant dense<0.000000e+00> : vector<8x32xf32>
    %24 = tpu.matmul %22, %23, %cst_16 {dimension_numbers = #tpu.dot_dimension_numbers<[1], [0], [0], [1], [0, 0, 1, 1], [], []>} : vector<8x5xbf16>, vector<5x32xbf16>, vector<8x32xf32> -> vector<8x32xf32>
    %25 = arith.addf %20, %24 : vector<8x32xf32>
    %26 = tpu.iota {dimensions = array<i32: 2>} : vector<1x8x7xi32>
    %c0_17 = arith.constant 0 : index
    %c0_18 = arith.constant 0 : index
    %c0_19 = arith.constant 0 : index
    %27 = vector.load %arg3[%c0_17, %c0_18, %c0_19] : memref<1x8x1xi32, #tpu.memory_space<vmem>>, vector<1x8x1xi32>
    %28 = vector.broadcast %27 : vector<1x8x1xi32> to vector<1x8x7xi32>
    %29 = arith.cmpi eq, %28, %26 : vector<1x8x7xi32>
    %30 = arith.extui %29 : vector<1x8x7xi1> to vector<1x8x7xi32>
    %31 = arith.sitofp %30 : vector<1x8x7xi32> to vector<1x8x7xf32>
    %32 = arith.truncf %31 : vector<1x8x7xf32> to vector<1x8x7xbf16>
    %33 = vector.shape_cast %32 : vector<1x8x7xbf16> to vector<8x7xbf16>
    %c0_20 = arith.constant 0 : index
    %c0_21 = arith.constant 0 : index
    %34 = vector.load %arg6[%c0_20, %c0_21] : memref<7x32xbf16, #tpu.memory_space<vmem>>, vector<7x32xbf16>
    %cst_22 = arith.constant dense<0.000000e+00> : vector<8x32xf32>
    %35 = tpu.matmul %33, %34, %cst_22 {dimension_numbers = #tpu.dot_dimension_numbers<[1], [0], [0], [1], [0, 0, 1, 1], [], []>} : vector<8x7xbf16>, vector<7x32xbf16>, vector<8x32xf32> -> vector<8x32xf32>
    %36 = arith.addf %25, %35 : vector<8x32xf32>
    %37 = vector.shape_cast %36 : vector<8x32xf32> to vector<1x8x32xf32>
    %c0_23 = arith.constant 0 : index
    %c0_24 = arith.constant 0 : index
    %38 = vector.load %arg7[%c0_23, %c0_24] : memref<8x32xf32, #tpu.memory_space<vmem>>, vector<8x32xf32>
    %39 = vector.shape_cast %38 : vector<8x32xf32> to vector<1x8x32xf32>
    %40 = arith.addf %37, %39 : vector<1x8x32xf32>
    %41 = arith.truncf %40 : vector<1x8x32xf32> to vector<1x8x32xbf16>
    %c0_25 = arith.constant 0 : index
    %c0_26 = arith.constant 0 : index
    %c0_27 = arith.constant 0 : index
    %42 = vector.load %arg8[%c0_25, %c0_26, %c0_27] : memref<1x8x32xbf16, #tpu.memory_space<vmem>>, vector<1x8x32xbf16>
    tpu.vector_store %arg8[%c0_25, %c0_26, %c0_27], %41 {strides = array<i32>} : memref<1x8x32xbf16, #tpu.memory_space<vmem>>, vector<1x8x32xbf16>,
    return
  }
  func.func @transform_0(%arg0: i32) -> (i32, i32, i32) {
    %c0_i32 = arith.constant 0 : i32
    %c0_i32_0 = arith.constant 0 : i32
    %c0_i32_1 = arith.constant 0 : i32
    return %arg0, %c0_i32, %c0_i32_0 : i32, i32, i32
  }
  func.func @transform_1(%arg0: i32) -> (i32, i32, i32) {
    %c0_i32 = arith.constant 0 : i32
    %c0_i32_0 = arith.constant 0 : i32
    %c0_i32_1 = arith.constant 0 : i32
    return %arg0, %c0_i32, %c0_i32_0 : i32, i32, i32
  }
  func.func @transform_2(%arg0: i32) -> (i32, i32, i32) {
    %c0_i32 = arith.constant 0 : i32
    %c0_i32_0 = arith.constant 0 : i32
    %c0_i32_1 = arith.constant 0 : i32
    return %arg0, %c0_i32, %c0_i32_0 : i32, i32, i32
  }
  func.func @transform_3(%arg0: i32) -> (i32, i32, i32) {
    %c0_i32 = arith.constant 0 : i32
    %c0_i32_0 = arith.constant 0 : i32
    %c0_i32_1 = arith.constant 0 : i32
    %c0_i32_2 = arith.constant 0 : i32
    return %c0_i32, %c0_i32_0, %c0_i32_1 : i32, i32, i32
  }
  func.func @transform_4(%arg0: i32) -> (i32, i32) {
    %c0_i32 = arith.constant 0 : i32
    %c0_i32_0 = arith.constant 0 : i32
    %c0_i32_1 = arith.constant 0 : i32
    return %c0_i32, %c0_i32_0 : i32, i32
  }
  func.func @transform_5(%arg0: i32) -> (i32, i32) {
    %c0_i32 = arith.constant 0 : i32
    %c0_i32_0 = arith.constant 0 : i32
    %c0_i32_1 = arith.constant 0 : i32
    return %c0_i32, %c0_i32_0 : i32, i32
  }
  func.func @transform_6(%arg0: i32) -> (i32, i32) {
    %c0_i32 = arith.constant 0 : i32
    %c0_i32_0 = arith.constant 0 : i32
    %c0_i32_1 = arith.constant 0 : i32
    return %c0_i32, %c0_i32_0 : i32, i32
  }
  func.func @transform_7(%arg0: i32) -> (i32, i32, i32) {
    %c0_i32 = arith.constant 0 : i32
    %c0_i32_0 = arith.constant 0 : i32
    %c0_i32_1 = arith.constant 0 : i32
    return %arg0, %c0_i32, %c0_i32_0 : i32, i32, i32
  }
}

</mosaic_0001>

<bundles_post_ra>
// kernel: tpu_custom_call.1
= control target key start
LH: loop header
LB: loop body
LE: loop exit
PB: predicated region body
PF: predicated region fallthrough
CT: control target
= control target key end

     0   :  { %12 = vsyncpa [#allocation3], 0  ;;  %s1072_s0 = inlined_call_operand.vmem [shape: bf16[2,8,4], index: 0, kind: input, shape index: {}]   ;;  %s1073_s1 = inlined_call_operand.vmem [shape: bf16[2,8,5], index: 1, kind: input, shape index: {}]   ;;  %s1074_s2 = inlined_call_operand.vmem [shape: s32[2,8,1], index: 2, kind: input, shape index: {}]   ;;  %s1075_s3 = inlined_call_operand.vmem [shape: bf16[3,4,32], index: 3, kind: input, shape index: {}]   ;;  %s1076_s4 = inlined_call_operand.vmem [shape: bf16[5,32], index: 4, kind: input, shape index: {}]   ;;  %s1077_s5 = inlined_call_operand.vmem [shape: bf16[7,32], index: 5, kind: input, shape index: {}]   ;;  %s1078_s6 = inlined_call_operand.vmem [shape: f32[8,32], index: 6, kind: input, shape index: {}]   ;;  %s1079_s7 = inlined_call_operand.hbm [shape: bf16[2,8,32], index: 7, kind: output, shape index: {}]  }
   0x1   :  { %14 = vsyncpa [#allocation3 + $0x1], 0  ;;  %s914_s24 = smov 0   ;;  %s916_s25 = smov 0  }
   0x2   :  { %s918_s26 = smov 0   ;;  %s920_s27 = smov 0  }
   0x3 LB: > { %s935_s28 = sadd.s32 4294967295, %s867_s27   ;;  %s699_s29 = sadd.s32 4294967294, %s867_s27   ;;  %s867_s27 = sphi %s920_s27, %s1085_s27   ;;  %s863_s26 = sphi %s918_s26, %s1084_s26   ;;  %s859_s25 = sphi %s916_s25, %s1083_s25   ;;  %s855_s24 = sphi %s914_s24, %s1082_s24  }
   0x4   : > { %s939_s30 = sadd.s32 1, %s867_s27   ;;  %s189_s8 = sadd.s32 1, %s863_s26 }
   0x5   : > { %s186_s9 = ssub.s32 %s867_s27, %s939_s30  ;;  %p199_p0 = scmp.ne.s32.totalorder %s863_s26, %s859_s25 }
   0x6   : > { %p187_p1 = scmp.eq.s32.totalorder %s186_s9, 0  ;;  %p200_p2 = scmp.eq.s32.totalorder %s935_s28, 1 }
   0x7   : > { %p205_p3 = scmp.ne.s32.totalorder %s859_s25, %s855_s24  ;;  %p206_p4 = scmp.eq.s32.totalorder %s699_s29, 1 }
   0x8   : > { %s950_s10 = scalar_select %p187_p1, %s863_s26, %s189_s8  }
   0x9   : > { %p952_p5 = por %p200_p2, %p199_p0  ;;  %p956_p6 = por %p206_p4, %p205_p3 }
   0xa   : > { %p702_p7 = scmp.ge.s32.totalorder %s867_s27, 1  ;;  %p257_p8 = scmp.lt.s32.totalorder %s867_s27, 3 }
   0xc   : > { %p258_p9 = pnand %p702_p7, %p257_p8 }
   0xd   : > { %p296_p10 = scmp.lt.s32.totalorder (!%p258_p9), %s935_s28, 1  ;;  %v708_v0 = vld [vmem:[%s1075_s3 + $0x2] sm:$0x3] (!%p258_p9)  ;;  %vm343_vm0 = vcmask (!%p258_p9), 1041408   ;;  %v869_v1 = vmov (!%p258_p9), 0   ;;  %v870_v2 = vmov (!%p258_p9), 0.0   ;;  %v535_v31 = vlaneseq (!%p258_p9) }
   0xe   : > { %261 = sbr.rel (%p258_p9) target bundleno = 390 (0x186), region = 48  ;;  %803 = vset.pattern.permute.xlu0 (!%p258_p9), %v869_v1  ;;  %730 = vmatprep.subr.bf16.mxu0 (!%p258_p9), %v870_v2  ;;  %v345_v3 = vsel (!%p258_p9), %vm343_vm0, %v708_v0, 0  ;;  %v336_v4 = vld [vmem:[%s1075_s3] sm:$0x3] (!%p258_p9)  ;;  %vm871_vm1 = vmmov (!%p258_p9), 0   ;;  %vm339_vm2 = vcmask (!%p258_p9), 31744  }
   0xf   : > { %731 = vmatpush3.bf16.msra.mxu0 (!%p258_p9), %v345_v3  ;;  %736 = vmatprep.subr.bf16.mxu1 (!%p258_p9), %v870_v2  ;;  %v391_v5 = vsel (!%p258_p9), %vm343_vm0, %v336_v4, 0  ;;  %v711_v6 = vld [vmem:[%s1075_s3 + $0x4] sm:$0x3] (!%p258_p9)  ;;  %vm488_vm3 = vcmask (!%p258_p9), 1042432   ;;  %v872_v10 = vmov (!%p258_p9), 65535   ;;  %vm323_vm4 = vcmask (!%p258_p9), 1040384  }
  0x10   : > { %732 = vmatprep.mubr.msk.bf16.mxu0 (!%p258_p9), %vm871_vm1, %v870_v2  ;;  %737 = vmatpush3.bf16.msra.mxu1 (!%p258_p9), %v391_v5  ;;  %v439_v7 = vsel (!%p258_p9), %vm343_vm0, %v711_v6, 0  ;;  %v489_v11 = vsel (!%p258_p9), %vm343_vm0, 4294967295, %v872_v10  ;;  %v551_v13 = vsel (!%p258_p9), %vm488_vm3, 4294967295, %v872_v10  ;;  %vm324_vm5 = vsmask.f32 (!%p258_p9), 256  ;;  %v597_v56 = vld [vmem:[%s1078_s6] sm:$0xff] (!%p258_p9) }
  0x11   : > { %738 = vmatprep.mubr.msk.bf16.mxu1 (!%p258_p9), %vm871_vm1, %v870_v2  ;;  %742 = vmatprep.subr.bf16.mxu0 (!%p258_p9), %v870_v2  ;;  %vm332_vm6 = vcmask (!%p258_p9), 1043456   ;;  %vm333_vm7 = vsmask.f32 (!%p258_p9), 3328  ;;  %v483_v16 = vld [vmem:[%s1076_s4] sm:$0x7] (!%p258_p9)  ;;  %v490_v17 = vsel (!%p258_p9), %vm488_vm3, %v489_v11, 0  ;;  %vm325_vm8 = vmand (!%p258_p9), %vm323_vm4, %vm324_vm5 }
  0x12   : > { %748 = vmatprep.subr.bf16.mxu1 (!%p258_p9), %v870_v2  ;;  %v552_v18 = vsel (!%p258_p9), %vm332_vm6, %v551_v13, 0  ;;  %v545_v23 = vld [vmem:[%s1077_s5] sm:$0xf] (!%p258_p9)  ;;  %vm334_vm9 = vmand (!%p258_p9), %vm332_vm6, %vm333_vm7  ;;  %v492_v25 = vand.u32 (!%p258_p9), %v490_v17, %v483_v16  ;;  %vm484_vm10 = vcmask (!%p258_p9), 39936   ;;  %v536_v32 = vand.u32 (!%p258_p9), 127, %v535_v31  ;;  %s717_s8 = sshll.u32 (!%p258_p9), %s935_s28, 6 }
  0x13   : > { %v554_v27 = vand.u32 (!%p258_p9), %v552_v18, %v545_v23  ;;  %vm546_vm12 = vcmask (!%p258_p9), 56320   ;;  %vm600_vm13 = vcmask (!%p258_p9), 257024   ;;  %s1030_s16 = scalar_lea.hbm (!%p258_p9), %s1079_s7, %s717_s8 }
  0x15   : > { %s972_s17 = scalar_select %p296_p10, %s935_s28, 1 }
  0x16   : > { %s873_s28 = smov [#allocation2]  }
  0x17   : > { %s706_s20 = sshll.u32 %s972_s17, 3  ;;  %s704_s21 = sshll.u32 %s972_s17, 2 }
  0x18   : > { %s307_s29 = scalar_lea.vmem %s1074_s2, %s706_s20  ;;  %s299_s13 = scalar_lea.vmem %s1072_s0, %s704_s21 }
  0x19   : > { %v537_v8 = vld [vmem:[%s307_s29] sm:$0xff]  ;;  %s303_s22 = scalar_lea.vmem %s1073_s1, %s704_s21  ;;  %s293_s17 = sand.u32 1, %s859_s25  }
  0x1a   : > { %v309_v9 = vld [vmem:[%s299_s13] sm:$0xf]  ;;  %539 = vperm.xlu0 %803, %v537_v8   ;;  %s703_s21 = sshll.u32 %s293_s17, 2  ;;  %s603_s18 = scalar_lea.sflag [#allocation3], %s293_s17 }
  0x1b   : > { %v707_v12 = vcombine.low %v309_v9, %v309_v9  ;;  %733 = vmatmul.mubr.msk.bf16.vlgmr.msra.gmra.mrb[0].mxu0 %vm339_vm2, %v309_v9  ;;  %v482_v30 = vld [vmem:[%s303_s22] sm:$0xf]  ;;  %s295_s9 = scalar_lea.vmem [#allocation2], %s703_s21  ;;  %s809_s20 = sshll.u32 %s873_s28, 4  ;;  %s810_s20 = int_to_ptr.vmem [resolvable:$false] %s809_s20 }
  0x1c   : > { %743 = vmatpush3.bf16.msra.mxu0 %v439_v7  ;;  %744 = vmatprep.mubr.msk.bf16.mxu0 %vm871_vm1, %v870_v2  ;;  %s616_s13 = sshll.u32 %s295_s9, 4  ;;  %s811_s22 = scalar_lea.vmem %s810_s20, 128  ;;  %s1032_s13 = int_to_ptr.vmem [resolvable:$true] %s616_s13 }
  0x1d   : > { %v314_v14 = vshrl.u32 %v707_v12, 16  ;;  %v319_v15 = vshll.u32 %v707_v12, 16  ;;  %754 = vmatprep.subr.bf16.mxu0 %v870_v2  ;;  %s805_s19 = scalar_lea.vmem %s1032_s13, 64  ;;  %p812_p0 = scmp.lt.s32.totalorder %s1032_s13, %s810_s20 }
  0x1e   : > { %p806_p11 = scmp.ne.s32.totalorder %s1032_s13, %s805_s19  ;;  %p813_p1 = scmp.lt.s32.totalorder %s811_s22, %s805_s19 }
  0x1f   : > { %v327_v19 = vrot.slane %v319_v15, 1  ;;  %v316_v20 = vrot.slane %v314_v14, 3  ;;  %v318_v21 = vrot.slane %v314_v14, 7  ;;  %v330_v22 = vrot.slane %v319_v15, 5 }
  0x20   : > { %p807_p12 = pnand %p806_p11, %p952_p5  ;;  %p814_p2 = por %p813_p1, %p812_p0 }
  0x21   : > { %v321_v24 = vor.u32 %v319_v15, %v318_v21  ;;  %v328_v26 = vor.u32 %v327_v19, %v314_v14 }
  0x22   : > { %p808_p13 = pneg %p807_p12 }
  0x23   : > { %v326_v28 = vsel %vm325_vm8, %v316_v20, %v321_v24  ;;  %v335_v29 = vsel %vm334_vm9, %v328_v26, %v330_v22 }
  0x24   : > { %739 = vmatmul.mubr.msk.bf16.vlgmr.msra.gmra.mrb[0].mxu1 %vm339_vm2, %v326_v28  ;;  %745 = vmatmul.mubr.msk.bf16.vlgmr.msra.gmra.mrb[4].mxu0 %vm339_vm2, %v335_v29  ;;  %p815_p3 = pnand %p814_p2, %p808_p13 }
  0x25   : > { %749 = vmatpush3.bf16.msra.mxu1 %v492_v25  ;;  %750 = vmatprep.mubr.msk.bf16.mxu1 %vm871_vm1, %v870_v2 }
  0x26   : > { %755 = vmatpush3.bf16.msra.mxu0 %v554_v27  ;;  %756 = vmatprep.mubr.msk.bf16.mxu0 %vm871_vm1, %v870_v2 }
  0x2c   : > { %751 = vmatmul.mubr.msk.bf16.vlgmr.msra.gmra.mrb[4].mxu1 %vm484_vm10, %v482_v30 }
  0x99   : > { %v540_v33 = vpop.permute.xlu0 %539 }
  0x9a   : > { %vm541_vm11 = vcmp.eq.s32.totalorder %v540_v33, %v536_v32 }
  0x9b   : > { %v714_v34 = vsel %vm541_vm11, 1.0, %v870_v2 }
  0x9c   : > { %v544_v35 = vpack.c.bf16 %v714_v34, %v714_v34 }
  0x9e   : > { %757 = vmatmul.mubr.msk.bf16.vlgmr.msra.gmra.mrb[8].mxu0 %vm546_vm12, %v544_v35 }
  0xee   : > { %v381_v36 = vpop.f32.mrb[0].mxu0 }
  0xef   : > { %v734_v37 = vpop.f32.mrb[1].mxu0 }
  0xf0   : > { %v384_v38 = vpop.f32.mrb[2].mxu0 }
  0xf1   : > { %v735_v39 = vpop.f32.mrb[3].mxu0 }
  0xf7   : > { %v427_v40 = vpop.f32.mrb[0].mxu1  ;;  %v475_v41 = vpop.f32.mrb[4].mxu0 }
  0xf8   : > { %v428_v42 = vadd.f32 %v427_v40, %v381_v36  ;;  %v740_v43 = vpop.f32.mrb[1].mxu1  ;;  %v746_v44 = vpop.f32.mrb[5].mxu0 }
  0xf9   : > { %v430_v45 = vpop.f32.mrb[2].mxu1  ;;  %v478_v46 = vpop.f32.mrb[6].mxu0 }
  0xfa   : > { %v481_v47 = vadd.f32 %v475_v41, %v428_v42  ;;  %v741_v48 = vpop.f32.mrb[3].mxu1  ;;  %v747_v49 = vpop.f32.mrb[7].mxu0 }
  0xff   : > { %v528_v50 = vpop.f32.mrb[4].mxu1 }
 0x100   : > { %v534_v51 = vadd.f32 %v528_v50, %v481_v47  ;;  %v752_v52 = vpop.f32.mrb[5].mxu1 }
 0x101   : > { %v531_v53 = vpop.f32.mrb[6].mxu1 }
 0x102   : > { %v753_v54 = vpop.f32.mrb[7].mxu1 }
 0x171   : > { %v590_v55 = vpop.f32.mrb[8].mxu0 }
 0x172   : > { %v596_v57 = vadd.f32 %v590_v55, %v534_v51  ;;  %v758_v58 = vpop.f32.mrb[9].mxu0 }
 0x173   : > { %v593_v59 = vpop.f32.mrb[10].mxu0 }
 0x174   : > { %v598_v60 = vadd.f32 %v597_v56, %v596_v57  ;;  %v759_v61 = vpop.f32.mrb[11].mxu0 }
 0x176   : > { %v599_v62 = vpack.c.bf16 %v598_v60, %v598_v60 }
 0x178   : > { %601 = vst.msk [vmem:[%s295_s9] sm:$0xf] %vm600_vm13, %v599_v62 }
 0x179   : > { %818 = shalt.err (!%p815_p3)
}
 0x17a   : > { %s819_s17 = scalar_lea.hbm %s1030_s16, 64  ;;  %s823_s29 = scalar_lea.hbm %s1079_s7, 128 }
 0x17b   : > { %p820_p4 = scmp.ne.s32.totalorder %s1030_s16, %s819_s17  ;;  %p824_p9 = scmp.lt.u32.totalorder %s1030_s16, %s1079_s7 }
 0x17c   : > { %p825_p10 = scmp.lt.u32.totalorder %s823_s29, %s819_s17  ;;  %p827_p12 = scmp.lt.u32.totalorder %s819_s17, %s1030_s16 }
 0x17d   : > { %p821_p7 = pnand %p820_p4, %p952_p5 }
 0x17e   : > { %p826_p11 = por %p825_p10, %p824_p9 }
 0x17f   : > { %p822_p8 = pneg %p821_p7 }
 0x180   : > { %p828_p13 = por %p827_p12, %p826_p11 }
 0x182   : > { %p829_p0 = pnand %p828_p13, %p822_p8 }
 0x184   : > { %832 = shalt.err (!%p829_p0)
}
 0x185   : > { %760 = dma.vmem_to_hbm [thread:$0]  (%p952_p5), %s1032_s13, 64, %s1030_s16, %s603_s18  }
 0x186 PF: > { %p766_p1 = scmp.ge.s32.totalorder %s867_s27, 2  ;;  %s628_s14 = sand.u32 1, %s855_s24  }
 0x187   : > { %s629_s15 = scalar_lea.sflag [#allocation3], %s628_s14 }
 0x188   : > { %p763_p2 = pnand %p766_p1, %p956_p6 }
 0x18a   : > { %850 = dma.done.wait (!%p763_p2), %s629_s15, 64  }
 0x18b   : > { %852 = vsyncadd (!%p763_p2), %s629_s15, 4294967232  ;;  %p17_p3 = scmp.ge.s32.totalorder %s939_s30, 4   ;;  %s1082_s24 = smov %s859_s25 }
 0x18c   : > { %s1083_s25 = smov %s863_s26  ;;  %s1084_s26 = smov %s950_s10 }
 0x18d   : > { %s1085_s27 = smov %s939_s30  ;;  %19 = sbr.rel (!%p17_p3) target bundleno = 3 (0x3), region = 91 }
 0x194   :  { %634 = vsyncpa [#allocation3], 1 }
 0x195   :  { %636 = vsyncpa [#allocation3 + $0x1], 1 }

</bundles_post_ra>
